<compile_context>
chip_gen: v6e
topology: v6e:2x2x1
jax: 0.10.0
libtpu: 0.0.40
codegen_flags: <defaults>
</compile_context>

<pallas_src>
import functools

import jax
import jax.numpy as jnp
from jax.experimental import pallas as pl
from jax.experimental.pallas import tpu as pltpu


def _round_up(x, n):
    return ((x + n - 1) // n) * n


def _fold_to_vreg(x):
    """Reduce [block_s, 128] -> [8, 128] by summing vreg-aligned 8-row chunks.

    Static, 8-aligned sublane slices => pure VPU vreg adds (no XLU, no copies).
    """
    n = x.shape[0] // 8
    acc = x[0:8, :]
    for i in range(1, n):
        acc = acc + x[8 * i:8 * (i + 1), :]
    return acc


def _iou_loss_kernel(pred_ref, tgt_ref, cls_ref, *rest, eps, has_weight):
    # pred_ref/tgt_ref: [4, BLOCK_S, 128]; cls_ref (and w_ref): [BLOCK_S, 128]
    # loss_acc_ref/cnt_acc_ref: [8, 128] resident accumulators (output blocks).
    if has_weight:
        w_ref, loss_acc_ref, cnt_acc_ref = rest
    else:
        loss_acc_ref, cnt_acc_ref = rest

    @pl.when(pl.program_id(1) == 0)
    def _init():
        loss_acc_ref[...] = jnp.zeros_like(loss_acc_ref)
        cnt_acc_ref[...] = jnp.zeros_like(cnt_acc_ref)

    p_l, p_t, p_r, p_b = pred_ref[0], pred_ref[1], pred_ref[2], pred_ref[3]
    t_l, t_t, t_r, t_b = tgt_ref[0], tgt_ref[1], tgt_ref[2], tgt_ref[3]

    target_area = (t_l + t_r) * (t_t + t_b)
    pred_area = (p_l + p_r) * (p_t + p_b)

    w_intersect = jnp.minimum(p_l, t_l) + jnp.minimum(p_r, t_r)
    h_intersect = jnp.minimum(p_b, t_b) + jnp.minimum(p_t, t_t)
    area_intersect = w_intersect * h_intersect
    area_union = target_area + pred_area - area_intersect

    pos = cls_ref[...] > 0.0
    mask_f = pos.astype(jnp.float32)

    # Mask the union before the reciprocal so padded / negative lanes never
    # generate NaN/Inf that could leak through later math.
    area_union_safe = jnp.where(pos, area_union, 1.0)
    iou = area_intersect * pl.reciprocal(area_union_safe, approx=True)
    loss = -jnp.log(iou + eps)
    if has_weight:
        loss = loss * w_ref[...]
    masked_loss = jnp.where(pos, loss, 0.0)

    loss_acc_ref[...] += _fold_to_vreg(masked_loss)
    cnt_acc_ref[...] += _fold_to_vreg(mask_f)


@functools.partial(jax.jit, static_argnames=("eps",))
def iou_loss(box_preds, box_targets, cls_targets, weight=None, eps=1e-5):
    box_preds = box_preds.reshape(-1, 4).astype(jnp.float32)
    box_targets = box_targets.reshape(-1, 4).astype(jnp.float32)
    cls_flat = cls_targets.reshape(-1).astype(jnp.float32)

    m = box_preds.shape[0]
    s_needed = -(-m // 128)                          # 128-lane rows needed
    block_s = min(512, _round_up(max(s_needed, 1), 8))   # rows per grid step
    nb = -(-s_needed // block_s)                      # sample blocks needed
    num_par = 2 if nb >= 2 else 1                     # 2-way split for v7x megacore
    nb = _round_up(nb, num_par)
    spc = nb // num_par                               # sample blocks per core
    sp = nb * block_s                                 # padded 128-lane rows
    mp = sp * 128                                     # padded sample count
    pad = mp - m

    # TODO(synk): ideally the producer emits channel-first [4, M] boxes so this
    # pad + transpose relayout pass over HBM disappears entirely; here it is at
    # least jitted together with the kernel call.
    pred_t = jnp.pad(box_preds, ((0, pad), (0, 0))).T.reshape(4, sp, 128)
    tgt_t = jnp.pad(box_targets, ((0, pad), (0, 0))).T.reshape(4, sp, 128)
    cls_t = jnp.pad(cls_flat, (0, pad)).reshape(sp, 128)   # pad -> cls=0 -> masked

    has_weight = weight is not None
    inputs = [pred_t, tgt_t, cls_t]
    in_specs = [
        pl.BlockSpec((4, block_s, 128), lambda c, s: (0, c * spc + s, 0)),
        pl.BlockSpec((4, block_s, 128), lambda c, s: (0, c * spc + s, 0)),
        pl.BlockSpec((block_s, 128), lambda c, s: (c * spc + s, 0)),
    ]
    if has_weight:
        w_flat = weight.reshape(-1).astype(jnp.float32)
        inputs.append(jnp.pad(w_flat, (0, pad)).reshape(sp, 128))
        in_specs.append(pl.BlockSpec((block_s, 128), lambda c, s: (c * spc + s, 0)))

    kernel = functools.partial(_iou_loss_kernel, eps=eps, has_weight=has_weight)

    loss_part, cnt_part = pl.pallas_call(
        kernel,
        out_shape=(
            jax.ShapeDtypeStruct((num_par * 8, 128), jnp.float32),
            jax.ShapeDtypeStruct((num_par * 8, 128), jnp.float32),
        ),
        grid_spec=pltpu.PrefetchScalarGridSpec(
            num_scalar_prefetch=0,
            grid=(num_par, spc),
            in_specs=in_specs,
            out_specs=(
                pl.BlockSpec((8, 128), lambda c, s: (c, 0)),
                pl.BlockSpec((8, 128), lambda c, s: (c, 0)),
            ),
        ),
        compiler_params=pltpu.CompilerParams(
            dimension_semantics=("parallel", "arbitrary"),
            vmem_limit_bytes=32 * 1024 * 1024,   # explicit; well under v7x's 64 MiB
        ),
    )(*inputs)

    loss_sum = jnp.sum(loss_part)
    cnt = jnp.sum(cnt_part)
    # Mean over positive rows (torch `losses.mean()` after boolean masking).
    # torch asserts losses.numel() != 0; we return 0.0 for zero-positive batches.
    return jnp.where(cnt > 0, loss_sum / jnp.maximum(cnt, 1.0), 0.0)


def _reference_iou_loss(box_preds, box_targets, cls_targets, weight=None, eps=1e-5):
    """Pure-JAX reference (boolean masking), for verification only."""
    bp = jnp.asarray(box_preds).reshape(-1, 4)
    bt = jnp.asarray(box_targets).reshape(-1, 4)
    ct = jnp.asarray(cls_targets).reshape(-1)
    mask = ct > 0
    bp = bp[mask]
    bt = bt[mask]
    ta = (bt[:, 0] + bt[:, 2]) * (bt[:, 1] + bt[:, 3])
    pa = (bp[:, 0] + bp[:, 2]) * (bp[:, 1] + bp[:, 3])
    wi = jnp.minimum(bp[:, 0], bt[:, 0]) + jnp.minimum(bp[:, 2], bt[:, 2])
    hi = jnp.minimum(bp[:, 3], bt[:, 3]) + jnp.minimum(bp[:, 1], bt[:, 1])
    ai = wi * hi
    au = ta + pa - ai
    losses = -jnp.log(ai / au + eps)
    if weight is not None:
        losses = losses * jnp.asarray(weight).reshape(-1)[mask]
    return losses.mean()


if __name__ == "__main__":
    # Small shapes: B=2, N=128 anchors -> M = 256 rows of [l, t, r, b].
    B, N = 2, 128
    M = B * N
    key = jax.random.PRNGKey(0)
    k1, k2, k3, k4 = jax.random.split(key, 4)

    box_preds = jax.random.uniform(k1, (M, 4), jnp.float32, minval=0.5, maxval=4.0)
    box_targets = jax.random.uniform(k2, (M, 4), jnp.float32, minval=0.5, maxval=4.0)
    cls_targets = (jax.random.uniform(k3, (M, 1)) > 0.5).astype(jnp.float32)
    weight = jax.random.uniform(k4, (M, 1), jnp.float32, minval=0.1, maxval=1.0)

    # Tolerance is loosened slightly because the kernel uses the EUP approximate
    # reciprocal for the IoU division (free slot in this memory-bound kernel).
    out = jax.block_until_ready(iou_loss(box_preds, box_targets, cls_targets))
    ref = _reference_iou_loss(box_preds, box_targets, cls_targets)
    assert jnp.allclose(out, ref, rtol=1e-2, atol=1e-2), (out, ref)

    out_w = jax.block_until_ready(
        iou_loss(box_preds, box_targets, cls_targets, weight=weight))
    ref_w = _reference_iou_loss(box_preds, box_targets, cls_targets, weight=weight)
    assert jnp.allclose(out_w, ref_w, rtol=1e-2, atol=1e-2), (out_w, ref_w)

    print("KERNEL_OK")
</pallas_src>

<mosaic_0001>
module attributes {stable_mosaic.version = 11 : i64} {
  func.func @_iou_loss_kernel(%arg0: i32, %arg1: i32, %arg2: memref<4x8x128xf32, #tpu.memory_space<vmem>>, %arg3: memref<4x8x128xf32, #tpu.memory_space<vmem>>, %arg4: memref<8x128xf32, #tpu.memory_space<vmem>>, %arg5: memref<8x128xf32, #tpu.memory_space<vmem>>, %arg6: memref<8x128xf32, #tpu.memory_space<vmem>>) attributes {dimension_semantics = [#tpu.dimension_semantics<parallel>, #tpu.dimension_semantics<arbitrary>], iteration_bounds = array<i64: 1, 1>, scalar_prefetch = 0 : i64, scratch_operands = 0 : i64, tpu.core_type = #tpu.core_type<tc>, window_params = [{transform_indices = @transform_0, window_bounds = array<i64: 4, 8, 128>}, {transform_indices = @transform_1, window_bounds = array<i64: 4, 8, 128>}, {transform_indices = @transform_2, window_bounds = array<i64: 8, 128>}, {transform_indices = @transform_3, window_bounds = array<i64: 8, 128>}, {transform_indices = @transform_4, window_bounds = array<i64: 8, 128>}]} {
    %c0_i32 = arith.constant 0 : i32
    %0 = arith.cmpi eq, %arg1, %c0_i32 : i32
    %1 = arith.extui %0 : i1 to i32
    %c0_i32_0 = arith.constant 0 : i32
    %2 = arith.cmpi ne, %1, %c0_i32_0 : i32
    scf.if %2 {
      %cst_35 = arith.constant 0.000000e+00 : f32
      %56 = vector.broadcast %cst_35 : f32 to vector<8x128xf32>
      %c0_36 = arith.constant 0 : index
      %c0_37 = arith.constant 0 : index
      %57 = vector.load %arg5[%c0_36, %c0_37] : memref<8x128xf32, #tpu.memory_space<vmem>>, vector<8x128xf32>
      tpu.vector_store %arg5[%c0_36, %c0_37], %56 {strides = array<i32>} : memref<8x128xf32, #tpu.memory_space<vmem>>, vector<8x128xf32>,
      %cst_38 = arith.constant 0.000000e+00 : f32
      %58 = vector.broadcast %cst_38 : f32 to vector<8x128xf32>
      %c0_39 = arith.constant 0 : index
      %c0_40 = arith.constant 0 : index
      %59 = vector.load %arg6[%c0_39, %c0_40] : memref<8x128xf32, #tpu.memory_space<vmem>>, vector<8x128xf32>
      tpu.vector_store %arg6[%c0_39, %c0_40], %58 {strides = array<i32>} : memref<8x128xf32, #tpu.memory_space<vmem>>, vector<8x128xf32>,
    } else {
    }
    %c0 = arith.constant 0 : index
    %c0_1 = arith.constant 0 : index
    %c0_2 = arith.constant 0 : index
    %3 = vector.load %arg2[%c0, %c0_1, %c0_2] : memref<4x8x128xf32, #tpu.memory_space<vmem>>, vector<1x8x128xf32>
    %4 = vector.shape_cast %3 : vector<1x8x128xf32> to vector<8x128xf32>
    %c1 = arith.constant 1 : index
    %c0_3 = arith.constant 0 : index
    %c0_4 = arith.constant 0 : index
    %5 = vector.load %arg2[%c1, %c0_3, %c0_4] : memref<4x8x128xf32, #tpu.memory_space<vmem>>, vector<1x8x128xf32>
    %6 = vector.shape_cast %5 : vector<1x8x128xf32> to vector<8x128xf32>
    %c2 = arith.constant 2 : index
    %c0_5 = arith.constant 0 : index
    %c0_6 = arith.constant 0 : index
    %7 = vector.load %arg2[%c2, %c0_5, %c0_6] : memref<4x8x128xf32, #tpu.memory_space<vmem>>, vector<1x8x128xf32>
    %8 = vector.shape_cast %7 : vector<1x8x128xf32> to vector<8x128xf32>
    %c3 = arith.constant 3 : index
    %c0_7 = arith.constant 0 : index
    %c0_8 = arith.constant 0 : index
    %9 = vector.load %arg2[%c3, %c0_7, %c0_8] : memref<4x8x128xf32, #tpu.memory_space<vmem>>, vector<1x8x128xf32>
    %10 = vector.shape_cast %9 : vector<1x8x128xf32> to vector<8x128xf32>
    %c0_9 = arith.constant 0 : index
    %c0_10 = arith.constant 0 : index
    %c0_11 = arith.constant 0 : index
    %11 = vector.load %arg3[%c0_9, %c0_10, %c0_11] : memref<4x8x128xf32, #tpu.memory_space<vmem>>, vector<1x8x128xf32>
    %12 = vector.shape_cast %11 : vector<1x8x128xf32> to vector<8x128xf32>
    %c1_12 = arith.constant 1 : index
    %c0_13 = arith.constant 0 : index
    %c0_14 = arith.constant 0 : index
    %13 = vector.load %arg3[%c1_12, %c0_13, %c0_14] : memref<4x8x128xf32, #tpu.memory_space<vmem>>, vector<1x8x128xf32>
    %14 = vector.shape_cast %13 : vector<1x8x128xf32> to vector<8x128xf32>
    %c2_15 = arith.constant 2 : index
    %c0_16 = arith.constant 0 : index
    %c0_17 = arith.constant 0 : index
    %15 = vector.load %arg3[%c2_15, %c0_16, %c0_17] : memref<4x8x128xf32, #tpu.memory_space<vmem>>, vector<1x8x128xf32>
    %16 = vector.shape_cast %15 : vector<1x8x128xf32> to vector<8x128xf32>
    %c3_18 = arith.constant 3 : index
    %c0_19 = arith.constant 0 : index
    %c0_20 = arith.constant 0 : index
    %17 = vector.load %arg3[%c3_18, %c0_19, %c0_20] : memref<4x8x128xf32, #tpu.memory_space<vmem>>, vector<1x8x128xf32>
    %18 = vector.shape_cast %17 : vector<1x8x128xf32> to vector<8x128xf32>
    %19 = arith.addf %12, %16 : vector<8x128xf32>
    %20 = arith.addf %14, %18 : vector<8x128xf32>
    %21 = arith.mulf %19, %20 : vector<8x128xf32>
    %22 = arith.addf %4, %8 : vector<8x128xf32>
    %23 = arith.addf %6, %10 : vector<8x128xf32>
    %24 = arith.mulf %22, %23 : vector<8x128xf32>
    %25 = arith.minimumf %4, %12 : vector<8x128xf32>
    %26 = arith.minimumf %8, %16 : vector<8x128xf32>
    %27 = arith.addf %25, %26 : vector<8x128xf32>
    %28 = arith.minimumf %10, %18 : vector<8x128xf32>
    %29 = arith.minimumf %6, %14 : vector<8x128xf32>
    %30 = arith.addf %28, %29 : vector<8x128xf32>
    %31 = arith.mulf %27, %30 : vector<8x128xf32>
    %32 = arith.addf %21, %24 : vector<8x128xf32>
    %33 = arith.subf %32, %31 : vector<8x128xf32>
    %c0_21 = arith.constant 0 : index
    %c0_22 = arith.constant 0 : index
    %34 = vector.load %arg4[%c0_21, %c0_22] : memref<8x128xf32, #tpu.memory_space<vmem>>, vector<8x128xf32>
    %cst = arith.constant 0.000000e+00 : f32
    %35 = vector.broadcast %cst : f32 to vector<8x128xf32>
    %36 = arith.cmpf ogt, %34, %35 : vector<8x128xf32>
    %37 = arith.extui %36 : vector<8x128xi1> to vector<8x128xi32>
    %38 = arith.sitofp %37 : vector<8x128xi32> to vector<8x128xf32>
    %cst_23 = arith.constant 1.000000e+00 : f32
    %39 = vector.broadcast %cst_23 : f32 to vector<8x128xf32>
    %40 = arith.select %36, %33, %39 : vector<8x128xi1>, vector<8x128xf32>
    %41 = tpu.reciprocal %40 {approx = true} : vector<8x128xf32> -> vector<8x128xf32>
    %42 = arith.mulf %31, %41 : vector<8x128xf32>
    %cst_24 = arith.constant 9.99999974E-6 : f32
    %43 = vector.broadcast %cst_24 : f32 to vector<8x128xf32>
    %44 = arith.addf %42, %43 : vector<8x128xf32>
    %45 = math.log %44 : vector<8x128xf32>
    %cst_25 = arith.constant 0.000000e+00 : f32
    %46 = vector.broadcast %cst_25 : f32 to vector<8x128xf32>
    %47 = arith.subf %46, %45 : vector<8x128xf32>
    %cst_26 = arith.constant 0.000000e+00 : f32
    %48 = vector.broadcast %cst_26 : f32 to vector<8x128xf32>
    %49 = arith.select %36, %47, %48 : vector<8x128xi1>, vector<8x128xf32>
    %c0_27 = arith.constant 0 : index
    %c0_28 = arith.constant 0 : index
    %50 = vector.load %arg5[%c0_27, %c0_28] : memref<8x128xf32, #tpu.memory_space<vmem>>, vector<8x128xf32>
    %51 = arith.addf %50, %49 : vector<8x128xf32>
    %c0_29 = arith.constant 0 : index
    %c0_30 = arith.constant 0 : index
    %52 = vector.load %arg5[%c0_29, %c0_30] : memref<8x128xf32, #tpu.memory_space<vmem>>, vector<8x128xf32>
    tpu.vector_store %arg5[%c0_29, %c0_30], %51 {strides = array<i32>} : memref<8x128xf32, #tpu.memory_space<vmem>>, vector<8x128xf32>,
    %c0_31 = arith.constant 0 : index
    %c0_32 = arith.constant 0 : index
    %53 = vector.load %arg6[%c0_31, %c0_32] : memref<8x128xf32, #tpu.memory_space<vmem>>, vector<8x128xf32>
    %54 = arith.addf %53, %38 : vector<8x128xf32>
    %c0_33 = arith.constant 0 : index
    %c0_34 = arith.constant 0 : index
    %55 = vector.load %arg6[%c0_33, %c0_34] : memref<8x128xf32, #tpu.memory_space<vmem>>, vector<8x128xf32>
    tpu.vector_store %arg6[%c0_33, %c0_34], %54 {strides = array<i32>} : memref<8x128xf32, #tpu.memory_space<vmem>>, vector<8x128xf32>,
    return
  }
  func.func @transform_0(%arg0: i32, %arg1: i32) -> (i32, i32, i32) {
    %c1_i32 = arith.constant 1 : i32
    %0 = arith.muli %arg0, %c1_i32 : i32
    %1 = arith.addi %0, %arg1 : i32
    %c0_i32 = arith.constant 0 : i32
    %c0_i32_0 = arith.constant 0 : i32
    %c0_i32_1 = arith.constant 0 : i32
    return %c0_i32, %1, %c0_i32_0 : i32, i32, i32
  }
  func.func @transform_1(%arg0: i32, %arg1: i32) -> (i32, i32, i32) {
    %c1_i32 = arith.constant 1 : i32
    %0 = arith.muli %arg0, %c1_i32 : i32
    %1 = arith.addi %0, %arg1 : i32
    %c0_i32 = arith.constant 0 : i32
    %c0_i32_0 = arith.constant 0 : i32
    %c0_i32_1 = arith.constant 0 : i32
    return %c0_i32, %1, %c0_i32_0 : i32, i32, i32
  }
  func.func @transform_2(%arg0: i32, %arg1: i32) -> (i32, i32) {
    %c1_i32 = arith.constant 1 : i32
    %0 = arith.muli %arg0, %c1_i32 : i32
    %1 = arith.addi %0, %arg1 : i32
    %c0_i32 = arith.constant 0 : i32
    %c0_i32_0 = arith.constant 0 : i32
    return %1, %c0_i32 : i32, i32
  }
  func.func @transform_3(%arg0: i32, %arg1: i32) -> (i32, i32) {
    %c0_i32 = arith.constant 0 : i32
    %c0_i32_0 = arith.constant 0 : i32
    return %arg0, %c0_i32 : i32, i32
  }
  func.func @transform_4(%arg0: i32, %arg1: i32) -> (i32, i32) {
    %c0_i32 = arith.constant 0 : i32
    %c0_i32_0 = arith.constant 0 : i32
    return %arg0, %c0_i32 : i32, i32
  }
}

</mosaic_0001>

<bundles_post_ra>
// kernel: iou_loss.1
= control target key start
LH: loop header
LB: loop body
LE: loop exit
PB: predicated region body
PF: predicated region fallthrough
CT: control target
= control target key end

     0   :  { %v158_v21 = vmov 0.0   ;;  %s220_s0 = inlined_call_operand.vmem [shape: f32[4,8,128], index: 0, kind: input, shape index: {}]   ;;  %s221_s1 = inlined_call_operand.vmem [shape: f32[4,8,128], index: 1, kind: input, shape index: {}]   ;;  %s222_s2 = inlined_call_operand.vmem [shape: f32[8,128], index: 2, kind: input, shape index: {}]   ;;  %s223_s4 = inlined_call_operand.vmem [shape: f32[8,128], index: 4, kind: output, shape index: {1}]   ;;  %s224_s3 = inlined_call_operand.vmem [shape: f32[8,128], index: 3, kind: output, shape index: {0}]  }
   0x1   :  { %v73_v0 = vld [vmem:[%s220_s0] sm:$0xff]  ;;  %v146_v1 = vld [vmem:[%s220_s0 + $0x8] sm:$0xff]  ;;  %v147_v2 = vld [vmem:[%s220_s0 + $0x10] sm:$0xff] }
   0x2   :  { %v148_v3 = vld [vmem:[%s220_s0 + $0x18] sm:$0xff]  ;;  %v80_v4 = vld [vmem:[%s221_s1] sm:$0xff]  ;;  %v149_v5 = vld [vmem:[%s221_s1 + $0x8] sm:$0xff]  ;;  %v90_v6 = vadd.f32 %v147_v2, %v73_v0 }
   0x3   :  { %v150_v7 = vld [vmem:[%s221_s1 + $0x10] sm:$0xff]  ;;  %v151_v8 = vld [vmem:[%s221_s1 + $0x18] sm:$0xff]  ;;  %v91_v9 = vadd.f32 %v148_v3, %v146_v1  ;;  %v93_v10 = vmin.f32 %v73_v0, %v80_v4  ;;  %v97_v11 = vmin.f32 %v146_v1, %v149_v5  ;;  %v102_v12 = vld [vmem:[%s222_s2] sm:$0xff] }
   0x4   :  { %v87_v13 = vadd.f32 %v150_v7, %v80_v4  ;;  %v88_v14 = vadd.f32 %v151_v8, %v149_v5  ;;  %v94_v15 = vmin.f32 %v147_v2, %v150_v7  ;;  %v96_v16 = vmin.f32 %v148_v3, %v151_v8 }
   0x5   :  { %v92_v17 = vmul.f32 %v91_v9, %v90_v6  ;;  %vm103_vm0 = vcmp.gt.f32.partialorder %v102_v12, 0.0 }
   0x6   :  { %v89_v18 = vmul.f32 %v88_v14, %v87_v13  ;;  %v95_v19 = vadd.f32 %v94_v15, %v93_v10  ;;  %v98_v20 = vadd.f32 %v97_v11, %v96_v16  ;;  %v152_v22 = vsel %vm103_vm0, 1.0, %v158_v21 }
   0x7   :  { %119 = vst [vmem:[%s223_s4] sm:$0xff] %v152_v22 }
   0x8   :  { %v99_v23 = vmul.f32 %v98_v20, %v95_v19  ;;  %v100_v24 = vadd.f32 %v92_v17, %v89_v18 }
   0xa   :  { %v101_v25 = vsub.f32 %v100_v24, %v99_v23 }
   0xc   :  { %v106_v26 = vsel %vm103_vm0, %v101_v25, 1.0 }
   0xd   :  { %154 = vrcp.f32 %v106_v26 }
  0x1a   :  { %v155_v27 = vpop.eup %154 }
  0x1b   :  { %v108_v28 = vmul.f32 %v155_v27, %v99_v23 }
  0x1d   :  { %v109_v29 = vadd.f32 1e-05, %v108_v28 }
  0x1f   :  { %156 = vlog2.f32 %v109_v29 }
  0x2c   :  { %v157_v30 = vpop.eup %156 }
  0x2d   :  { %v111_v31 = vmul.f32 0.6931472, %v157_v30 }
  0x2f   :  { %v112_v32 = vsub.f32 0.0, %v111_v31 }
  0x31   :  { %v113_v33 = vsel %vm103_vm0, %v112_v32, 0.0 }
  0x32   :  { %116 = vst [vmem:[%s224_s3] sm:$0xff] %v113_v33 }

</bundles_post_ra>
